<compile_context>
chip_gen: v5e
topology: v5e:2x2
jax: 0.10.0
libtpu: 0.0.40
codegen_flags: <defaults>
</compile_context>

<pallas_src>
import functools

import jax
import jax.numpy as jnp
from jax import lax
from jax.experimental import pallas as pl
from jax.experimental.pallas import tpu as pltpu


def _fused_dwsep_bn_kernel(x_ref, wdw_ref, wblk_ref, gamma_ref, beta_ref,
                           mask_ref, o_ref, *, N, C, Cout, K, Wp, dilation,
                           Lpad, count, eps):
    # x_ref:    (N*C, Lpad)      activations, channels on sublanes, flat spatial on lanes
    # wdw_ref:  (N*C, K*K)       depthwise weights, pre-tiled per (n, c) row
    # wblk_ref: (N*Cout, N*C)    block-diagonal pointwise (1x1 conv) weights
    # gamma/beta_ref: (Cout, 1)
    # mask_ref: (1, Lpad)        1.0 on valid output positions, 0.0 elsewhere
    # o_ref:    (N*Cout, Lpad)   lane-dense flat output
    x = x_ref[...]                                    # (N*C, Lpad) f32
    wdw = wdw_ref[...]                                # (N*C, K*K)  f32, 1 vreg

    # ---- depthwise conv: K*K taps as XLU lane-rolls + VPU broadcast-FMAs.
    # Positions that would wrap a row / land in the pad tail produce junk that
    # is masked out of the BN stats and sliced away by the wrapper.
    acc = jnp.zeros((N * C, Lpad), jnp.float32)
    for ky in range(K):
        for kx in range(K):
            tap = ky * K + kx
            delta = (ky * Wp + kx) * dilation
            # win[:, p] == x[:, p + delta] for all valid p (no wrap needed).
            win = x if delta == 0 else pltpu.roll(x, shift=Lpad - delta, axis=1)
            acc = acc + win * wdw[:, tap:tap + 1]

    # ---- pointwise 1x1 conv on the MXU (idle otherwise): one block-diagonal
    # matmul handles every sample at once; fp32 contract precision keeps it
    # bit-comparable with the f32 reference.
    y = jnp.dot(wblk_ref[...], acc,
                preferred_element_type=jnp.float32,
                precision=jax.lax.Precision.HIGHEST)   # (N*Cout, Lpad)

    # ---- BatchNorm2d training-mode batch stats over the valid (N, Ho, Wo)
    # positions.  Mask broadcast hoisted once and reused; y stays resident in
    # vregs and the per-n slices below are 8-aligned sublane selects.
    maskb = jnp.broadcast_to(mask_ref[...], (Cout, Lpad))
    inv_count = 1.0 / count

    # TODO(synk): switch these Python-unrolled per-sample loops to
    # lax.fori_loop(..., unroll=True) over a VMEM scratch once N grows.
    s = jnp.zeros((Cout, 1), jnp.float32)
    for n in range(N):
        s = s + jnp.sum(y[n * Cout:(n + 1) * Cout, :] * maskb,
                        axis=1, keepdims=True)
    mean = s * inv_count                              # (Cout, 1)

    v = jnp.zeros((Cout, 1), jnp.float32)
    for n in range(N):
        d = (y[n * Cout:(n + 1) * Cout, :] - mean) * maskb
        v = v + jnp.sum(d * d, axis=1, keepdims=True)
    var = v * inv_count                               # biased variance (BN train)

    inv = lax.rsqrt(var + eps)
    scale = gamma_ref[...] * inv                      # (Cout, 1)
    shift = beta_ref[...] - mean * scale              # (Cout, 1)

    # ---- normalize + store: full-width unmasked lane-dense stores (one per
    # sample); every element of o_ref is written.
    for n in range(N):
        o_ref[n * Cout:(n + 1) * Cout, :] = (
            y[n * Cout:(n + 1) * Cout, :] * scale + shift).astype(o_ref.dtype)


def bn_depthwise_separable_conv2d(x, w_dw, w_pw, gamma, beta, *,
                                  stride=1, padding=0, dilation=1, eps=1e-5):
    """x: (N, C, H, W); w_dw: (C, 1, K, K); w_pw: (Cout, C, 1, 1)."""
    N, C, H, W = x.shape
    Cout = w_pw.shape[0]
    K = w_dw.shape[-1]

    if padding:
        # TODO(synk): fold the zero-pad halo into the kernel (mask edge taps)
        # instead of a wrapper-level HBM pad once padded configs matter at scale.
        x = jnp.pad(x, ((0, 0), (0, 0), (padding, padding), (padding, padding)))
    Hp, Wp = x.shape[2], x.shape[3]
    Ho = (Hp - dilation * (K - 1) - 1) // stride + 1
    Wo = (Wp - dilation * (K - 1) - 1) // stride + 1

    L = Hp * Wp
    Lpad = ((L + 127) // 128) * 128        # lane-dense width -> unmasked stores

    # Channels-major, spatial flattened onto the lane axis (free reshape).
    x_flat = x.reshape(N * C, L).astype(jnp.float32)
    if Lpad != L:
        x_flat = jnp.pad(x_flat, ((0, 0), (0, Lpad - L)))
    # Depthwise weights tiled so row n*C + c of x_flat matches its weight row.
    wdw_flat = jnp.tile(w_dw.reshape(C, K * K).astype(jnp.float32), (N, 1))
    # Block-diagonal pointwise weights: one MXU matmul covers all N samples.
    wblk = jnp.kron(jnp.eye(N, dtype=jnp.float32),
                    w_pw.reshape(Cout, C).astype(jnp.float32))
    gamma_col = gamma.reshape(Cout, 1).astype(jnp.float32)
    beta_col = beta.reshape(Cout, 1).astype(jnp.float32)

    # Validity mask over the Lpad flat positions (host-side: no vector integer
    # div/mod inside the kernel).  Valid == an actual (oy, ox) output position.
    q = jnp.arange(Lpad)
    row, col = q // Wp, q % Wp
    valid = (((row % stride) == 0) & ((row // stride) < Ho) &
             ((col % stride) == 0) & ((col // stride) < Wo))
    mask = valid.astype(jnp.float32).reshape(1, Lpad)
    count = float(N * Ho * Wo)

    kernel = functools.partial(
        _fused_dwsep_bn_kernel, N=N, C=C, Cout=Cout, K=K, Wp=Wp,
        dilation=dilation, Lpad=Lpad, count=count, eps=eps)

    out_flat = pl.pallas_call(
        kernel,
        out_shape=jax.ShapeDtypeStruct((N * Cout, Lpad), jnp.float32),
        grid=(1,),
        in_specs=[
            pl.BlockSpec((N * C, Lpad), lambda i: (0, 0)),
            pl.BlockSpec((N * C, K * K), lambda i: (0, 0)),
            pl.BlockSpec((N * Cout, N * C), lambda i: (0, 0)),
            pl.BlockSpec((Cout, 1), lambda i: (0, 0)),
            pl.BlockSpec((Cout, 1), lambda i: (0, 0)),
            pl.BlockSpec((1, Lpad), lambda i: (0, 0)),
        ],
        out_specs=pl.BlockSpec((N * Cout, Lpad), lambda i: (0, 0)),
        compiler_params=pltpu.CompilerParams(
            dimension_semantics=("arbitrary",)),
    )(x_flat, wdw_flat, wblk, gamma_col, beta_col, mask)

    # Free reshapes + tiny strided slice back to the NCHW valid region.
    out = out_flat.reshape(N, Cout, Lpad)[:, :, :L].reshape(N, Cout, Hp, Wp)
    return out[:, :, ::stride, ::stride][:, :, :Ho, :Wo]


def _reference(x, w_dw, w_pw, gamma, beta, *, stride=1, padding=0, dilation=1,
               eps=1e-5):
    """Pure-JAX/XLA reference mirroring PyTorch semantics (training-mode BN)."""
    C = x.shape[1]
    dn = ("NCHW", "OIHW", "NCHW")
    dw = lax.conv_general_dilated(
        x, w_dw, window_strides=(stride, stride),
        padding=[(padding, padding), (padding, padding)],
        rhs_dilation=(dilation, dilation),
        feature_group_count=C, dimension_numbers=dn)
    pw = lax.conv_general_dilated(dw, w_pw, window_strides=(1, 1),
                                  padding="VALID", dimension_numbers=dn)
    mean = pw.mean(axis=(0, 2, 3), keepdims=True)
    var = ((pw - mean) ** 2).mean(axis=(0, 2, 3), keepdims=True)
    g = gamma.reshape(1, -1, 1, 1)
    b = beta.reshape(1, -1, 1, 1)
    return g * (pw - mean) / jnp.sqrt(var + eps) + b


if __name__ == "__main__":
    # Module config: in_channels=4, out_channels=8, kernel_size=3.
    # Input: (N=2, C=4, H=16, W=16) NCHW.
    N, C, Cout, K, H, W = 2, 4, 8, 3, 16, 16

    key = jax.random.PRNGKey(0)
    kx, kdw, kpw, kg, kb = jax.random.split(key, 5)
    x = jax.random.normal(kx, (N, C, H, W), dtype=jnp.float32)
    w_dw = 0.1 * jax.random.normal(kdw, (C, 1, K, K), dtype=jnp.float32)
    w_pw = 0.1 * jax.random.normal(kpw, (Cout, C, 1, 1), dtype=jnp.float32)
    gamma = 1.0 + 0.1 * jax.random.normal(kg, (Cout,), dtype=jnp.float32)
    beta = 0.1 * jax.random.normal(kb, (Cout,), dtype=jnp.float32)

    # Primary config (matches the shipped module defaults).
    out = bn_depthwise_separable_conv2d(x, w_dw, w_pw, gamma, beta,
                                        stride=1, padding=0, dilation=1)
    out = jax.block_until_ready(out)
    ref = _reference(x, w_dw, w_pw, gamma, beta, stride=1, padding=0, dilation=1)
    assert out.shape == (N, Cout, H - K + 1, W - K + 1), out.shape
    assert jnp.allclose(out, ref, rtol=1e-4, atol=1e-4), \
        f"max abs err = {jnp.max(jnp.abs(out - ref))}"

    # Extra configs exercising the stride / padding / dilation mask logic
    # (previous review correctness concern).
    for (s_, p_, d_) in [(2, 1, 1), (1, 0, 2)]:
        o = bn_depthwise_separable_conv2d(x, w_dw, w_pw, gamma, beta,
                                          stride=s_, padding=p_, dilation=d_)
        o = jax.block_until_ready(o)
        r = _reference(x, w_dw, w_pw, gamma, beta,
                       stride=s_, padding=p_, dilation=d_)
        assert o.shape == r.shape, (o.shape, r.shape)
        assert jnp.allclose(o, r, rtol=1e-4, atol=1e-4), \
            f"(stride={s_}, pad={p_}, dil={d_}) max abs err = " \
            f"{jnp.max(jnp.abs(o - r))}"

    print("KERNEL_OK")
</pallas_src>

<mosaic_0001>
module attributes {stable_mosaic.version = 11 : i64} {
  func.func @_fused_dwsep_bn_kernel(%arg0: i32, %arg1: memref<8x256xf32, #tpu.memory_space<vmem>>, %arg2: memref<8x9xf32, #tpu.memory_space<vmem>>, %arg3: memref<16x8xf32, #tpu.memory_space<vmem>>, %arg4: memref<8x1xf32, #tpu.memory_space<vmem>>, %arg5: memref<8x1xf32, #tpu.memory_space<vmem>>, %arg6: memref<1x256xf32, #tpu.memory_space<vmem>>, %arg7: memref<16x256xf32, #tpu.memory_space<vmem>>) attributes {dimension_semantics = [#tpu.dimension_semantics<arbitrary>], iteration_bounds = array<i64: 1>, scalar_prefetch = 0 : i64, scratch_operands = 0 : i64, tpu.core_type = #tpu.core_type<tc>, window_params = [{pipeline_mode = #tpu.pipeline_mode<synchronous>, transform_indices = @transform_0, window_bounds = array<i64: 8, 256>}, {pipeline_mode = #tpu.pipeline_mode<synchronous>, transform_indices = @transform_1, window_bounds = array<i64: 8, 9>}, {pipeline_mode = #tpu.pipeline_mode<synchronous>, transform_indices = @transform_2, window_bounds = array<i64: 16, 8>}, {pipeline_mode = #tpu.pipeline_mode<synchronous>, transform_indices = @transform_3, window_bounds = array<i64: 8, 1>}, {pipeline_mode = #tpu.pipeline_mode<synchronous>, transform_indices = @transform_4, window_bounds = array<i64: 8, 1>}, {pipeline_mode = #tpu.pipeline_mode<synchronous>, transform_indices = @transform_5, window_bounds = array<i64: 1, 256>}, {pipeline_mode = #tpu.pipeline_mode<synchronous>, transform_indices = @transform_6, window_bounds = array<i64: 16, 256>}]} {
    %c0 = arith.constant 0 : index
    %c0_0 = arith.constant 0 : index
    %0 = vector.load %arg1[%c0, %c0_0] : memref<8x256xf32, #tpu.memory_space<vmem>>, vector<8x256xf32>
    %c0_1 = arith.constant 0 : index
    %c0_2 = arith.constant 0 : index
    %1 = vector.load %arg2[%c0_1, %c0_2] : memref<8x9xf32, #tpu.memory_space<vmem>>, vector<8x9xf32>
    %cst = arith.constant 0.000000e+00 : f32
    %2 = vector.broadcast %cst : f32 to vector<8x256xf32>
    %3 = vector.extract_strided_slice %1 {offsets = [0, 0], sizes = [8, 1], strides = [1, 1]} : vector<8x9xf32> to vector<8x1xf32>
    %4 = vector.broadcast %3 : vector<8x1xf32> to vector<8x256xf32>
    %5 = arith.mulf %0, %4 : vector<8x256xf32>
    %6 = arith.addf %2, %5 : vector<8x256xf32>
    %c255_i32 = arith.constant 255 : i32
    %7 = tpu.dynamic_rotate %0 by %c255_i32 dim 1 : vector<8x256xf32>, i32 -> vector<8x256xf32>
    %8 = vector.extract_strided_slice %1 {offsets = [0, 1], sizes = [8, 1], strides = [1, 1]} : vector<8x9xf32> to vector<8x1xf32>
    %9 = vector.broadcast %8 : vector<8x1xf32> to vector<8x256xf32>
    %10 = arith.mulf %7, %9 : vector<8x256xf32>
    %11 = arith.addf %6, %10 : vector<8x256xf32>
    %c254_i32 = arith.constant 254 : i32
    %12 = tpu.dynamic_rotate %0 by %c254_i32 dim 1 : vector<8x256xf32>, i32 -> vector<8x256xf32>
    %13 = vector.extract_strided_slice %1 {offsets = [0, 2], sizes = [8, 1], strides = [1, 1]} : vector<8x9xf32> to vector<8x1xf32>
    %14 = vector.broadcast %13 : vector<8x1xf32> to vector<8x256xf32>
    %15 = arith.mulf %12, %14 : vector<8x256xf32>
    %16 = arith.addf %11, %15 : vector<8x256xf32>
    %c240_i32 = arith.constant 240 : i32
    %17 = tpu.dynamic_rotate %0 by %c240_i32 dim 1 : vector<8x256xf32>, i32 -> vector<8x256xf32>
    %18 = vector.extract_strided_slice %1 {offsets = [0, 3], sizes = [8, 1], strides = [1, 1]} : vector<8x9xf32> to vector<8x1xf32>
    %19 = vector.broadcast %18 : vector<8x1xf32> to vector<8x256xf32>
    %20 = arith.mulf %17, %19 : vector<8x256xf32>
    %21 = arith.addf %16, %20 : vector<8x256xf32>
    %c239_i32 = arith.constant 239 : i32
    %22 = tpu.dynamic_rotate %0 by %c239_i32 dim 1 : vector<8x256xf32>, i32 -> vector<8x256xf32>
    %23 = vector.extract_strided_slice %1 {offsets = [0, 4], sizes = [8, 1], strides = [1, 1]} : vector<8x9xf32> to vector<8x1xf32>
    %24 = vector.broadcast %23 : vector<8x1xf32> to vector<8x256xf32>
    %25 = arith.mulf %22, %24 : vector<8x256xf32>
    %26 = arith.addf %21, %25 : vector<8x256xf32>
    %c238_i32 = arith.constant 238 : i32
    %27 = tpu.dynamic_rotate %0 by %c238_i32 dim 1 : vector<8x256xf32>, i32 -> vector<8x256xf32>
    %28 = vector.extract_strided_slice %1 {offsets = [0, 5], sizes = [8, 1], strides = [1, 1]} : vector<8x9xf32> to vector<8x1xf32>
    %29 = vector.broadcast %28 : vector<8x1xf32> to vector<8x256xf32>
    %30 = arith.mulf %27, %29 : vector<8x256xf32>
    %31 = arith.addf %26, %30 : vector<8x256xf32>
    %c224_i32 = arith.constant 224 : i32
    %32 = tpu.dynamic_rotate %0 by %c224_i32 dim 1 : vector<8x256xf32>, i32 -> vector<8x256xf32>
    %33 = vector.extract_strided_slice %1 {offsets = [0, 6], sizes = [8, 1], strides = [1, 1]} : vector<8x9xf32> to vector<8x1xf32>
    %34 = vector.broadcast %33 : vector<8x1xf32> to vector<8x256xf32>
    %35 = arith.mulf %32, %34 : vector<8x256xf32>
    %36 = arith.addf %31, %35 : vector<8x256xf32>
    %c223_i32 = arith.constant 223 : i32
    %37 = tpu.dynamic_rotate %0 by %c223_i32 dim 1 : vector<8x256xf32>, i32 -> vector<8x256xf32>
    %38 = vector.extract_strided_slice %1 {offsets = [0, 7], sizes = [8, 1], strides = [1, 1]} : vector<8x9xf32> to vector<8x1xf32>
    %39 = vector.broadcast %38 : vector<8x1xf32> to vector<8x256xf32>
    %40 = arith.mulf %37, %39 : vector<8x256xf32>
    %41 = arith.addf %36, %40 : vector<8x256xf32>
    %c222_i32 = arith.constant 222 : i32
    %42 = tpu.dynamic_rotate %0 by %c222_i32 dim 1 : vector<8x256xf32>, i32 -> vector<8x256xf32>
    %43 = vector.extract_strided_slice %1 {offsets = [0, 8], sizes = [8, 1], strides = [1, 1]} : vector<8x9xf32> to vector<8x1xf32>
    %44 = vector.broadcast %43 : vector<8x1xf32> to vector<8x256xf32>
    %45 = arith.mulf %42, %44 : vector<8x256xf32>
    %46 = arith.addf %41, %45 : vector<8x256xf32>
    %c0_3 = arith.constant 0 : index
    %c0_4 = arith.constant 0 : index
    %47 = vector.load %arg3[%c0_3, %c0_4] : memref<16x8xf32, #tpu.memory_space<vmem>>, vector<16x8xf32>
    %cst_5 = arith.constant dense<0.000000e+00> : vector<16x256xf32>
    %48 = tpu.matmul %47, %46, %cst_5 {dimension_numbers = #tpu.dot_dimension_numbers<[1], [0], [0], [1], [0, 0, 1, 1], [], []>, precision = #tpu.contract_precision<fp32>} : vector<16x8xf32>, vector<8x256xf32>, vector<16x256xf32> -> vector<16x256xf32>
    %c0_6 = arith.constant 0 : index
    %c0_7 = arith.constant 0 : index
    %49 = vector.load %arg6[%c0_6, %c0_7] : memref<1x256xf32, #tpu.memory_space<vmem>>, vector<1x256xf32>
    %50 = vector.shape_cast %49 : vector<1x256xf32> to vector<1x256xf32>
    %51 = vector.broadcast %50 : vector<1x256xf32> to vector<8x256xf32>
    %cst_8 = arith.constant 0.000000e+00 : f32
    %52 = vector.broadcast %cst_8 : f32 to vector<8x1xf32>
    %53 = vector.extract_strided_slice %48 {offsets = [0, 0], sizes = [8, 256], strides = [1, 1]} : vector<16x256xf32> to vector<8x256xf32>
    %54 = arith.mulf %53, %51 : vector<8x256xf32>
    %cst_9 = arith.constant dense<0.000000e+00> : vector<8xf32>
    %55 = vector.multi_reduction <add>, %54, %cst_9 [1] : vector<8x256xf32> to vector<8xf32>
    %56 = vector.shape_cast %55 : vector<8xf32> to vector<8x1xf32>
    %57 = arith.addf %52, %56 : vector<8x1xf32>
    %58 = vector.extract_strided_slice %48 {offsets = [8, 0], sizes = [8, 256], strides = [1, 1]} : vector<16x256xf32> to vector<8x256xf32>
    %59 = arith.mulf %58, %51 : vector<8x256xf32>
    %cst_10 = arith.constant dense<0.000000e+00> : vector<8xf32>
    %60 = vector.multi_reduction <add>, %59, %cst_10 [1] : vector<8x256xf32> to vector<8xf32>
    %61 = vector.shape_cast %60 : vector<8xf32> to vector<8x1xf32>
    %62 = arith.addf %57, %61 : vector<8x1xf32>
    %cst_11 = arith.constant 0.00255102036 : f32
    %63 = vector.broadcast %cst_11 : f32 to vector<8x1xf32>
    %64 = arith.mulf %62, %63 : vector<8x1xf32>
    %cst_12 = arith.constant 0.000000e+00 : f32
    %65 = vector.broadcast %cst_12 : f32 to vector<8x1xf32>
    %66 = vector.extract_strided_slice %48 {offsets = [0, 0], sizes = [8, 256], strides = [1, 1]} : vector<16x256xf32> to vector<8x256xf32>
    %67 = vector.broadcast %64 : vector<8x1xf32> to vector<8x256xf32>
    %68 = arith.subf %66, %67 : vector<8x256xf32>
    %69 = arith.mulf %68, %51 : vector<8x256xf32>
    %70 = arith.mulf %69, %69 : vector<8x256xf32>
    %cst_13 = arith.constant dense<0.000000e+00> : vector<8xf32>
    %71 = vector.multi_reduction <add>, %70, %cst_13 [1] : vector<8x256xf32> to vector<8xf32>
    %72 = vector.shape_cast %71 : vector<8xf32> to vector<8x1xf32>
    %73 = arith.addf %65, %72 : vector<8x1xf32>
    %74 = vector.extract_strided_slice %48 {offsets = [8, 0], sizes = [8, 256], strides = [1, 1]} : vector<16x256xf32> to vector<8x256xf32>
    %75 = vector.broadcast %64 : vector<8x1xf32> to vector<8x256xf32>
    %76 = arith.subf %74, %75 : vector<8x256xf32>
    %77 = arith.mulf %76, %51 : vector<8x256xf32>
    %78 = arith.mulf %77, %77 : vector<8x256xf32>
    %cst_14 = arith.constant dense<0.000000e+00> : vector<8xf32>
    %79 = vector.multi_reduction <add>, %78, %cst_14 [1] : vector<8x256xf32> to vector<8xf32>
    %80 = vector.shape_cast %79 : vector<8xf32> to vector<8x1xf32>
    %81 = arith.addf %73, %80 : vector<8x1xf32>
    %cst_15 = arith.constant 0.00255102036 : f32
    %82 = vector.broadcast %cst_15 : f32 to vector<8x1xf32>
    %83 = arith.mulf %81, %82 : vector<8x1xf32>
    %cst_16 = arith.constant 9.99999974E-6 : f32
    %84 = vector.broadcast %cst_16 : f32 to vector<8x1xf32>
    %85 = arith.addf %83, %84 : vector<8x1xf32>
    %86 = math.rsqrt %85 : vector<8x1xf32>
    %c0_17 = arith.constant 0 : index
    %c0_18 = arith.constant 0 : index
    %87 = vector.load %arg4[%c0_17, %c0_18] : memref<8x1xf32, #tpu.memory_space<vmem>>, vector<8x1xf32>
    %88 = arith.mulf %87, %86 : vector<8x1xf32>
    %c0_19 = arith.constant 0 : index
    %c0_20 = arith.constant 0 : index
    %89 = vector.load %arg5[%c0_19, %c0_20] : memref<8x1xf32, #tpu.memory_space<vmem>>, vector<8x1xf32>
    %90 = arith.mulf %64, %88 : vector<8x1xf32>
    %91 = arith.subf %89, %90 : vector<8x1xf32>
    %92 = vector.extract_strided_slice %48 {offsets = [0, 0], sizes = [8, 256], strides = [1, 1]} : vector<16x256xf32> to vector<8x256xf32>
    %93 = vector.broadcast %88 : vector<8x1xf32> to vector<8x256xf32>
    %94 = arith.mulf %92, %93 : vector<8x256xf32>
    %95 = vector.broadcast %91 : vector<8x1xf32> to vector<8x256xf32>
    %96 = arith.addf %94, %95 : vector<8x256xf32>
    %c0_21 = arith.constant 0 : index
    %c0_22 = arith.constant 0 : index
    %97 = vector.load %arg7[%c0_21, %c0_22] : memref<16x256xf32, #tpu.memory_space<vmem>>, vector<8x256xf32>
    tpu.vector_store %arg7[%c0_21, %c0_22], %96 {strides = array<i32>} : memref<16x256xf32, #tpu.memory_space<vmem>>, vector<8x256xf32>,
    %98 = vector.extract_strided_slice %48 {offsets = [8, 0], sizes = [8, 256], strides = [1, 1]} : vector<16x256xf32> to vector<8x256xf32>
    %99 = vector.broadcast %88 : vector<8x1xf32> to vector<8x256xf32>
    %100 = arith.mulf %98, %99 : vector<8x256xf32>
    %101 = vector.broadcast %91 : vector<8x1xf32> to vector<8x256xf32>
    %102 = arith.addf %100, %101 : vector<8x256xf32>
    %c8 = arith.constant 8 : index
    %c0_23 = arith.constant 0 : index
    %103 = vector.load %arg7[%c8, %c0_23] : memref<16x256xf32, #tpu.memory_space<vmem>>, vector<8x256xf32>
    tpu.vector_store %arg7[%c8, %c0_23], %102 {strides = array<i32>} : memref<16x256xf32, #tpu.memory_space<vmem>>, vector<8x256xf32>,
    return
  }
  func.func @transform_0(%arg0: i32) -> (i32, i32) {
    %c0_i32 = arith.constant 0 : i32
    %c0_i32_0 = arith.constant 0 : i32
    %c0_i32_1 = arith.constant 0 : i32
    return %c0_i32, %c0_i32_0 : i32, i32
  }
  func.func @transform_1(%arg0: i32) -> (i32, i32) {
    %c0_i32 = arith.constant 0 : i32
    %c0_i32_0 = arith.constant 0 : i32
    %c0_i32_1 = arith.constant 0 : i32
    return %c0_i32, %c0_i32_0 : i32, i32
  }
  func.func @transform_2(%arg0: i32) -> (i32, i32) {
    %c0_i32 = arith.constant 0 : i32
    %c0_i32_0 = arith.constant 0 : i32
    %c0_i32_1 = arith.constant 0 : i32
    return %c0_i32, %c0_i32_0 : i32, i32
  }
  func.func @transform_3(%arg0: i32) -> (i32, i32) {
    %c0_i32 = arith.constant 0 : i32
    %c0_i32_0 = arith.constant 0 : i32
    %c0_i32_1 = arith.constant 0 : i32
    return %c0_i32, %c0_i32_0 : i32, i32
  }
  func.func @transform_4(%arg0: i32) -> (i32, i32) {
    %c0_i32 = arith.constant 0 : i32
    %c0_i32_0 = arith.constant 0 : i32
    %c0_i32_1 = arith.constant 0 : i32
    return %c0_i32, %c0_i32_0 : i32, i32
  }
  func.func @transform_5(%arg0: i32) -> (i32, i32) {
    %c0_i32 = arith.constant 0 : i32
    %c0_i32_0 = arith.constant 0 : i32
    %c0_i32_1 = arith.constant 0 : i32
    return %c0_i32, %c0_i32_0 : i32, i32
  }
  func.func @transform_6(%arg0: i32) -> (i32, i32) {
    %c0_i32 = arith.constant 0 : i32
    %c0_i32_0 = arith.constant 0 : i32
    %c0_i32_1 = arith.constant 0 : i32
    return %c0_i32, %c0_i32_0 : i32, i32
  }
}

</mosaic_0001>

<bundles_post_ra>
// kernel: tpu_custom_call.1
= control target key start
LH: loop header
LB: loop body
LE: loop exit
PB: predicated region body
PF: predicated region fallthrough
CT: control target
= control target key end

     0   :  { %v676_v2 = vmov 0   ;;  %s677_s25 = smov 127   ;;  %v678_v3 = vmov 2   ;;  %s831_s0 = inlined_call_operand.vmem [shape: f32[8,256], index: 0, kind: input, shape index: {}]   ;;  %s832_s1 = inlined_call_operand.vmem [shape: f32[8,9], index: 1, kind: input, shape index: {}]   ;;  %s833_s2 = inlined_call_operand.vmem [shape: f32[16,8], index: 2, kind: input, shape index: {}]   ;;  %s834_s3 = inlined_call_operand.vmem [shape: f32[8,1], index: 3, kind: input, shape index: {}]   ;;  %s835_s4 = inlined_call_operand.vmem [shape: f32[8,1], index: 4, kind: input, shape index: {}]   ;;  %s836_s5 = inlined_call_operand.vmem [shape: f32[1,256], index: 5, kind: input, shape index: {}]   ;;  %s837_s6 = inlined_call_operand.hbm [shape: f32[16,256], index: 6, kind: output, shape index: {}]  }
   0x1   :  { %v734_v0 = vld [vmem:[%s831_s0] sm:$0xff]  ;;  %637 = vset.pattern.permute.xlu1 %v676_v2  ;;  %639 = vset.pattern.permute.xlu0 %v678_v3 }
   0x2   :  { %v26_v1 = vld [vmem:[%s832_s1] sm:$0xff]  ;;  %36 = vrot.lane.b32.xlu0 %v734_v0, %s677_s25 }
   0x3   :  { %29 = vperm.xlu1 %637, %v26_v1  }
   0x4   :  { %11 = vsyncpa [#allocation3], 0  ;;  %s679_s26 = smov 126   ;;  %646 = vset.pattern.permute.xlu2 %v676_v2  ;;  %v744_v4 = vld [vmem:[%s831_s0 + $0x8] sm:$0xff]  ;;  %v680_v5 = vmov 1   ;;  %s681_s1 = smov 112   ;;  %v40_v27 = vlaneseq }
   0x5   :  { %53 = vrot.lane.b32.xlu2 %v734_v0, %s679_s26  ;;  %v682_v6 = vmov 3   ;;  %s683_s29 = smov 111   ;;  %s684_s0 = smov 110   ;;  %v685_v7 = vmov 4   ;;  %v687_v8 = vmov 5   ;;  %v689_v9 = vmov 6  }
   0x6   :  { %s686_s30 = smov 96   ;;  %s688_s7 = smov 95   ;;  %v691_v10 = vmov 7   ;;  %v692_v11 = vmov 8   ;;  %v760_v28 = vand.u32 127, %v40_v27  ;;  %v158_v35 = vld [vmem:[%s833_s2] sm:$0xff] }
   0x7   :  { %s690_s8 = smov 94   ;;  %vm160_vm2 = vcmask 64512   ;;  %v159_v59 = vld [vmem:[%s833_s2 + $0x8] sm:$0xff]  ;;  %s605_s20 = sshll.u32 %s837_s6, 4  ;;  %s606_s20 = int_to_ptr.hbm [resolvable:$true] %s605_s20 }
   0x8   :  { %vm42_vm0 = vcmp.lt.s32.totalorder %v760_v28, 127  ;;  %vm57_vm1 = vcmp.lt.s32.totalorder %v760_v28, 126  ;;  %vm72_vm3 = vcmp.lt.s32.totalorder %v760_v28, 112  ;;  %vm87_vm4 = vcmp.lt.s32.totalorder %v760_v28, 111  ;;  %s695_s21 = smov 16  }
   0x9   :  { %v162_v43 = vsel %vm160_vm2, %v158_v35, 0  ;;  %vm102_vm5 = vcmp.lt.s32.totalorder %v760_v28, 110  ;;  %vm117_vm6 = vcmp.lt.s32.totalorder %v760_v28, 96  ;;  %vm132_vm7 = vcmp.lt.s32.totalorder %v760_v28, 95 }
   0xa   :  { %38 = vrot.lane.b32.xlu0 %v744_v4, %s677_s25  ;;  %v773_v53 = vand.u32 4294901760, %v162_v43  ;;  %vm147_vm8 = vcmp.lt.s32.totalorder %v760_v28, 94 }
   0xb   :  { %638 = vset.pattern.permute.xlu1 %v680_v5 }
   0xc   :  { %46 = vperm.xlu1 %638, %v26_v1   ;;  %v781_v3 = vsub.f32 %v162_v43, %v773_v53 }
   0xd   :  { %55 = vrot.lane.b32.xlu2 %v744_v4, %s679_s26 }
  0x12   :  { %61 = vperm.xlu0 %639, %v26_v1  }
  0x14   :  { %68 = vrot.lane.b32.xlu1 %v734_v0, %s681_s1 }
  0x15   :  { %70 = vrot.lane.b32.xlu2 %v744_v4, %s681_s1  ;;  %640 = vset.pattern.permute.xlu1 %v682_v6 }
  0x1a   :  { %85 = vrot.lane.b32.xlu0 %v744_v4, %s683_s29 }
  0x1b   :  { %647 = vset.pattern.permute.xlu0 %v676_v2 }
  0x1c   :  { %76 = vperm.xlu1 %640, %v26_v1  }
  0x1d   :  { %83 = vrot.lane.b32.xlu2 %v734_v0, %s683_s29 }
  0x22   :  { %100 = vrot.lane.b32.xlu0 %v744_v4, %s684_s0 }
  0x24   :  { %641 = vset.pattern.permute.xlu1 %v685_v7  ;;  %v165_v7 = vsel %vm160_vm2, %v159_v59, 0 }
  0x25   :  { %98 = vrot.lane.b32.xlu2 %v734_v0, %s684_s0  ;;  %91 = vperm.xlu1 %641, %v26_v1  }
  0x2a   :  { %115 = vrot.lane.b32.xlu0 %v744_v4, %s686_s30 }
  0x2d   :  { %113 = vrot.lane.b32.xlu2 %v734_v0, %s686_s30  ;;  %642 = vset.pattern.permute.xlu1 %v687_v8 }
  0x2e   :  { %106 = vperm.xlu1 %642, %v26_v1  }
  0x32   :  { %130 = vrot.lane.b32.xlu0 %v744_v4, %s688_s7 }
  0x35   :  { %128 = vrot.lane.b32.xlu2 %v734_v0, %s688_s7 }
  0x36   :  { %643 = vset.pattern.permute.xlu1 %v689_v9 }
  0x37   :  { %121 = vperm.xlu1 %643, %v26_v1  }
  0x3a   :  { %145 = vrot.lane.b32.xlu0 %v744_v4, %s690_s8 }
  0x3d   :  { %143 = vrot.lane.b32.xlu2 %v734_v0, %s690_s8 }
  0x3f   :  { %644 = vset.pattern.permute.xlu1 %v691_v10 }
  0x40   :  { %136 = vperm.xlu1 %644, %v26_v1  }
  0x48   :  { %645 = vset.pattern.permute.xlu1 %v692_v11 }
  0x49   :  { %151 = vperm.xlu1 %645, %v26_v1  }
  0x5f   :  { %v54_v12 = vpop.permute.xlu2 %53 }
  0x67   :  { %v56_v15 = vpop.permute.xlu2 %55 }
  0x68   :  { %v58_v37 = vsel %vm57_vm1, %v54_v12, %v56_v15  ;;  %v59_v38 = vsel %vm57_vm1, %v56_v15, %v54_v12 }
  0x6f   :  { %v71_v18 = vpop.permute.xlu2 %70 }
  0x74   :  { %v37_v13 = vpop.permute.xlu0 %36 }
  0x75   :  { %v30_v14 = vpop.permute.xlu1 %29 }
  0x76   :  { %v32_v39 = vmul.f32 %v30_v14, %v734_v0  ;;  %v33_v44 = vmul.f32 %v30_v14, %v744_v4 }
  0x77   :  { %v84_v21 = vpop.permute.xlu2 %83 }
  0x7c   :  { %v39_v16 = vpop.permute.xlu0 %38 }
  0x7d   :  { %v43_v32 = vsel %vm42_vm0, %v37_v13, %v39_v16  ;;  %v44_v33 = vsel %vm42_vm0, %v39_v16, %v37_v13  ;;  %v786_v16 = vand.u32 4294901760, %v781_v3 }
  0x7e   :  { %v47_v17 = vpop.permute.xlu1 %46 }
  0x7f   :  { %v99_v25 = vpop.permute.xlu2 %98  ;;  %v49_v36 = vmul.f32 %v47_v17, %v43_v32  ;;  %v50_v40 = vmul.f32 %v47_v17, %v44_v33  ;;  %v788_v17 = vand.u32 4294901760, %v165_v7  ;;  %v187_v27 = vsub.f32 %v781_v3, %v786_v16 }
  0x81   :  { %v51_v46 = vadd.f32 %v49_v36, %v32_v39  ;;  %v52_v54 = vadd.f32 %v50_v40, %v33_v44  ;;  %v193_v28 = vsub.f32 %v165_v7, %v788_v17  ;;  %v188_v35 = vand.u32 4294901760, %v187_v27 }
  0x83   :  { %v194_v36 = vand.u32 4294901760, %v193_v28 }
  0x84   :  { %v62_v19 = vpop.permute.xlu0 %61 }
  0x85   :  { %v64_v45 = vmul.f32 %v62_v19, %v58_v37  ;;  %v65_v47 = vmul.f32 %v62_v19, %v59_v38 }
  0x86   :  { %v69_v20 = vpop.permute.xlu1 %68 }
  0x87   :  { %v114_v30 = vpop.permute.xlu2 %113  ;;  %v73_v48 = vsel %vm72_vm3, %v69_v20, %v71_v18  ;;  %v74_v49 = vsel %vm72_vm3, %v71_v18, %v69_v20  ;;  %v66_v56 = vadd.f32 %v64_v45, %v51_v46  ;;  %v67_v60 = vadd.f32 %v65_v47, %v52_v54 }
  0x8c   :  { %v86_v23 = vpop.permute.xlu0 %85 }
  0x8d   :  { %v88_v51 = vsel %vm87_vm4, %v84_v21, %v86_v23  ;;  %v89_v52 = vsel %vm87_vm4, %v86_v23, %v84_v21 }
  0x8e   :  { %v77_v22 = vpop.permute.xlu1 %76 }
  0x8f   :  { %v129_v41 = vpop.permute.xlu2 %128  ;;  %v79_v50 = vmul.f32 %v77_v22, %v73_v48  ;;  %v80_v55 = vmul.f32 %v77_v22, %v74_v49 }
  0x91   :  { %v81_v0 = vadd.f32 %v79_v50, %v66_v56  ;;  %v82_v4 = vadd.f32 %v80_v55, %v67_v60 }
  0x94   :  { %v101_v26 = vpop.permute.xlu0 %100 }
  0x95   :  { %v103_v57 = vsel %vm102_vm5, %v99_v25, %v101_v26  ;;  %v104_v58 = vsel %vm102_vm5, %v101_v26, %v99_v25 }
  0x97   :  { %v92_v24 = vpop.permute.xlu1 %91  ;;  %v144_v14 = vpop.permute.xlu2 %143 }
  0x98   :  { %v94_v61 = vmul.f32 %v92_v24, %v88_v51  ;;  %v95_v62 = vmul.f32 %v92_v24, %v89_v52 }
  0x9a   :  { %v96_v10 = vadd.f32 %v94_v61, %v81_v0  ;;  %v97_v11 = vadd.f32 %v95_v62, %v82_v4 }
  0x9c   :  { %v116_v31 = vpop.permute.xlu0 %115 }
  0x9d   :  { %v118_v1 = vsel %vm117_vm6, %v114_v30, %v116_v31  ;;  %v119_v2 = vsel %vm117_vm6, %v116_v31, %v114_v30 }
  0xa0   :  { %v107_v29 = vpop.permute.xlu1 %106 }
  0xa1   :  { %v109_v5 = vmul.f32 %v107_v29, %v103_v57  ;;  %v110_v6 = vmul.f32 %v107_v29, %v104_v58 }
  0xa3   :  { %v111_v18 = vadd.f32 %v109_v5, %v96_v10  ;;  %v112_v19 = vadd.f32 %v110_v6, %v97_v11 }
  0xa4   :  { %v131_v42 = vpop.permute.xlu0 %130 }
  0xa5   :  { %v133_v8 = vsel %vm132_vm7, %v129_v41, %v131_v42  ;;  %v134_v9 = vsel %vm132_vm7, %v131_v42, %v129_v41  ;;  %v195_v41 = vsub.f32 %v193_v28, %v194_v36 }
  0xa7   :  { %v196_v46 = vand.u32 4294901760, %v195_v41 }
  0xa9   :  { %v122_v34 = vpop.permute.xlu1 %121 }
  0xaa   :  { %v124_v12 = vmul.f32 %v122_v34, %v118_v1  ;;  %v125_v13 = vmul.f32 %v122_v34, %v119_v2 }
  0xac   :  { %v146_v15 = vpop.permute.xlu0 %145  ;;  %v126_v24 = vadd.f32 %v124_v12, %v111_v18  ;;  %v127_v25 = vadd.f32 %v125_v13, %v112_v19 }
  0xad   :  { %v148_v22 = vsel %vm147_vm8, %v144_v14, %v146_v15  ;;  %v149_v23 = vsel %vm147_vm8, %v146_v15, %v144_v14 }
  0xb2   :  { %v137_v63 = vpop.permute.xlu1 %136 }
  0xb3   :  { %v139_v20 = vmul.f32 %v137_v63, %v133_v8  ;;  %v140_v21 = vmul.f32 %v137_v63, %v134_v9  ;;  %v521_v8 = vld [vmem:[%s836_s5] sm:$0x3] }
  0xb4   :  { %v523_v14 = vperm.slane %v521_v8, 0  ;;  %v524_v18 = vperm.slane %v521_v8, 1 }
  0xb5   :  { %v141_v29 = vadd.f32 %v139_v20, %v126_v24  ;;  %v142_v30 = vadd.f32 %v140_v21, %v127_v25 }
  0xbb   :  { %v152_v26 = vpop.permute.xlu1 %151 }
  0xbc   :  { %v154_v31 = vmul.f32 %v152_v26, %v148_v22  ;;  %v155_v32 = vmul.f32 %v152_v26, %v149_v23 }
  0xbe   :  { %v156_v33 = vadd.f32 %v154_v31, %v141_v29  ;;  %v157_v34 = vadd.f32 %v155_v32, %v142_v30 }
  0xc0   :  { %v182_v37 = vand.u32 4294901760, %v156_v33  ;;  %v359_v38 = vand.u32 4294901760, %v157_v34 }
  0xc2   :  { %v394_v39 = vsub.f32 %v157_v34, %v359_v38  ;;  %183 = vmatpush.msra.mxu0 %v182_v37  ;;  %276 = vmatpush.msra.mxu3 %v182_v37  ;;  %v217_v40 = vsub.f32 %v156_v33, %v182_v37 }
  0xc3   :  { %189 = vmatmul.f32.vlgmr.msra.gmra.mxu0 %v188_v35  ;;  %280 = vmatmul.f32.vlgmr.msra.gmra.mxu3 %v786_v16 }
  0xc4   :  { %248 = vmatpush.msra.mxu2 %v217_v40  ;;  %v218_v42 = vand.u32 4294901760, %v217_v40  ;;  %v395_v43 = vand.u32 4294901760, %v394_v39 }
  0xc5   :  { %251 = vmatmul.f32.vlgmr.msra.gmra.mxu2 %v781_v3 }
  0xc6   :  { %360 = vmatpush.msrb.mxu2 %v359_v38  ;;  %308 = vmatpush.msrb.mxu0 %v218_v42  ;;  %v219_v44 = vsub.f32 %v217_v40, %v218_v42  ;;  %v396_v45 = vsub.f32 %v394_v39, %v395_v43 }
  0xc8   :  { %485 = vmatpush.msra.mxu2 %v395_v43  ;;  %425 = vmatpush.msra.mxu0 %v394_v39  ;;  %v220_v47 = vand.u32 4294901760, %v219_v44  ;;  %v397_v48 = vand.u32 4294901760, %v396_v45 }
  0xca   :  { %221 = vmatpush.msra.mxu1 %v220_v47  ;;  %398 = vmatpush.msrb.mxu3 %v397_v48 }
  0xcb   :  { %197 = vmatmul.f32.gmra.mxu0 %v196_v46  ;;  %223 = vmatmul.f32.vlgmr.msra.gmra.mxu1 %v773_v53 }
  0xcc   :  { %334 = vmatpush.msrb.mxu1 %v182_v37  ;;  %511 = vmatpush.msra.mxu3 %v359_v38 }
  0xcd   :  { %286 = vmatmul.f32.gmra.mxu3 %v194_v36  ;;  %256 = vmatmul.f32.gmra.mxu2 %v193_v28 }
  0xce   :  { %453 = vmatpush.msra.mxu1 %v359_v38 }
  0xd3   :  { %227 = vmatmul.f32.gmra.mxu1 %v788_v17  ;;  %310 = vmatmul.f32.vlgmr.msrb.gmra.mxu0 %v773_v53 }
  0xd5   :  { %400 = vmatmul.f32.vlgmr.msrb.gmra.mxu3 %v773_v53  ;;  %366 = vmatmul.f32.vlgmr.msrb.gmra.mxu2 %v188_v35 }
  0xdb   :  { %314 = vmatmul.f32.gmra.mxu0 %v788_v17  ;;  %336 = vmatmul.f32.vlgmr.msrb.gmra.mxu1 %v773_v53 }
  0xdd   :  { %404 = vmatmul.f32.gmra.mxu3 %v788_v17  ;;  %374 = vmatmul.f32.gmra.mxu2 %v196_v46 }
  0xe3   :  { %340 = vmatmul.f32.gmra.mxu1 %v788_v17  ;;  %428 = vmatmul.f32.vlgmr.msra.gmra.mxu0 %v781_v3 }
  0xe5   :  { %513 = vmatmul.f32.vlgmr.msra.gmra.mxu3 %v773_v53  ;;  %487 = vmatmul.f32.vlgmr.msra.gmra.mxu2 %v773_v53 }
  0xeb   :  { %433 = vmatmul.f32.gmra.mxu0 %v193_v28  ;;  %457 = vmatmul.f32.vlgmr.msra.gmra.mxu1 %v786_v16 }
  0xed   :  { %517 = vmatmul.f32.gmra.mxu3 %v788_v17  ;;  %491 = vmatmul.f32.gmra.mxu2 %v788_v17 }
  0xf3   :  { %463 = vmatmul.f32.gmra.mxu1 %v194_v36 }
 0x140   :  { %v190_v49 = vpop.f32.mrf.mxu0 }
 0x146   :  { %v281_v50 = vpop.f32.mrf.mxu3 }
 0x148   :  { %v198_v51 = vpop.f32.mrf.mxu0  ;;  %v224_v52 = vpop.f32.mrf.mxu1 }
 0x149   :  { %v252_v54 = vpop.f32.mrf.mxu2  ;;  %v225_v62 = vadd.f32 %v224_v52, %v190_v49 }
 0x14b   :  { %v253_v3 = vadd.f32 %v252_v54, %v225_v62 }
 0x14d   :  { %v282_v5 = vadd.f32 %v281_v50, %v253_v3  ;;  %v572_v3 = vld [vmem:[%s834_s3] sm:$0xff]  ;;  %s693_s3 = smov [#allocation2]  }
 0x14e   :  { %s603_s17 = sshll.u32 %s693_s3, 4  ;;  %s604_s17 = int_to_ptr.vmem [resolvable:$true] %s603_s17 }
 0x150   :  { %v228_v55 = vpop.f32.mrf.mxu1  ;;  %v311_v56 = vpop.f32.mrf.mxu0 }
 0x151   :  { %v257_v57 = vpop.f32.mrf.mxu2  ;;  %v287_v58 = vpop.f32.mrf.mxu3  ;;  %v229_v6 = vadd.f32 %v228_v55, %v198_v51  ;;  %v312_v10 = vadd.f32 %v311_v56, %v282_v5 }
 0x153   :  { %v258_v15 = vadd.f32 %v257_v57, %v229_v6  ;;  %v574_v6 = vld [vmem:[%s835_s4] sm:$0xff]  ;;  %s694_s4 = smov 256  }
 0x155   :  { %v288_v22 = vadd.f32 %v287_v58, %v258_v15 }
 0x158   :  { %v315_v59 = vpop.f32.mrf.mxu0  ;;  %v337_v60 = vpop.f32.mrf.mxu1 }
 0x159   :  { %v367_v53 = vpop.f32.mrf.mxu2  ;;  %v401_v61 = vpop.f32.mrf.mxu3  ;;  %v812_v16 = vadd.f32 %v337_v60, %v312_v10  ;;  %v316_v27 = vadd.f32 %v315_v59, %v288_v22 }
 0x15a   :  { %v402_v4 = vadd.f32 %v401_v61, %v367_v53 }
 0x15b   :  { %v527_v24 = vmul.f32 %v523_v14, %v812_v16 }
 0x160   :  { %v341_v63 = vpop.f32.mrf.mxu1  ;;  %v429_v2 = vpop.f32.mrf.mxu0 }
 0x161   :  { %v375_v0 = vpop.f32.mrf.mxu2  ;;  %v405_v1 = vpop.f32.mrf.mxu3  ;;  %v430_v7 = vadd.f32 %v429_v2, %v402_v4  ;;  %v342_v32 = vadd.f32 %v341_v63, %v316_v27 }
 0x162   :  { %v406_v20 = vadd.f32 %v405_v1, %v375_v0 }
 0x163   :  { %v533_v35 = vmul.f32 %v523_v14, %v342_v32 }
 0x168   :  { %v458_v9 = vpop.f32.mrf.mxu1  ;;  %v434_v19 = vpop.f32.mrf.mxu0 }
 0x169   :  { %v459_v11 = vadd.f32 %v458_v9, %v430_v7  ;;  %v488_v12 = vpop.f32.mrf.mxu2  ;;  %v514_v13 = vpop.f32.mrf.mxu3  ;;  %v435_v23 = vadd.f32 %v434_v19, %v406_v20 }
 0x16b   :  { %v489_v17 = vadd.f32 %v488_v12, %v459_v11 }
 0x16d   :  { %v814_v21 = vadd.f32 %v514_v13, %v489_v17 }
 0x16f   :  { %v528_v25 = vmul.f32 %v524_v18, %v814_v21 }
 0x170   :  { %v464_v26 = vpop.f32.mrf.mxu1 }
 0x171   :  { %v465_v28 = vadd.f32 %v464_v26, %v435_v23  ;;  %v492_v29 = vpop.f32.mrf.mxu2  ;;  %v529_v30 = vadd.f32 %v528_v25, %v527_v24  ;;  %v518_v31 = vpop.f32.mrf.mxu3 }
 0x173   :  { %v493_v33 = vadd.f32 %v492_v29, %v465_v28  ;;  %530 = vadd.xlane.f32.xlu2 %v529_v30 }
 0x175   :  { %v519_v34 = vadd.f32 %v518_v31, %v493_v33 }
 0x177   :  { %v534_v36 = vmul.f32 %v524_v18, %v519_v34 }
 0x179   :  { %v535_v37 = vadd.f32 %v534_v36, %v533_v35 }
 0x17b   :  { %536 = vadd.xlane.f32.xlu0 %v535_v37 }
 0x1e6   :  { %v531_v38 = vpop.xlane.xlu2 %530 }
 0x1ee   :  { %v537_v39 = vpop.xlane.xlu0 %536 }
 0x1ef   :  { %v538_v40 = vadd.f32 %v537_v39, %v531_v38 }
 0x1f1   :  { %v539_v41 = vmul.f32 0.0025510204, %v538_v40 }
 0x1f3   :  { %v550_v42 = vsub.f32 %v342_v32, %v539_v41  ;;  %v551_v43 = vsub.f32 %v519_v34, %v539_v41  ;;  %v540_v44 = vsub.f32 %v812_v16, %v539_v41  ;;  %v541_v45 = vsub.f32 %v814_v21, %v539_v41 }
 0x1f5   :  { %v552_v46 = vmul.f32 %v550_v42, %v523_v14  ;;  %v553_v47 = vmul.f32 %v551_v43, %v524_v18  ;;  %v542_v48 = vmul.f32 %v540_v44, %v523_v14  ;;  %v543_v49 = vmul.f32 %v541_v45, %v524_v18 }
 0x1f7   :  { %v554_v50 = vmul.f32 %v552_v46, %v552_v46  ;;  %v555_v51 = vmul.f32 %v553_v47, %v553_v47  ;;  %v544_v52 = vmul.f32 %v542_v48, %v542_v48  ;;  %v545_v54 = vmul.f32 %v543_v49, %v543_v49 }
 0x1f9   :  { %v556_v55 = vadd.f32 %v555_v51, %v554_v50  ;;  %v546_v56 = vadd.f32 %v545_v54, %v544_v52 }
 0x1fb   :  { %557 = vadd.xlane.f32.xlu2 %v556_v55  ;;  %547 = vadd.xlane.f32.xlu1 %v546_v56 }
 0x26e   :  { %v558_v57 = vpop.xlane.xlu2 %557  ;;  %v548_v58 = vpop.xlane.xlu1 %547 }
 0x26f   :  { %v559_v59 = vadd.f32 %v558_v57, %v548_v58 }
 0x271   :  { %v560_v60 = vmul.f32 0.0025510204, %v559_v59 }
 0x273   :  { %v561_v53 = vadd.f32 1e-05, %v560_v60 }
 0x275   :  { %648 = vrsqrt.f32 %v561_v53  ;;  %vm568_vm10 = vweird.f32 %v561_v53 }
 0x27b   :  { %v649_v61 = vpop.eup %648 }
 0x27c   :  { %v563_v62 = vmul.f32 %v649_v61, %v561_v53  ;;  %vm569_vm9 = vweird.f32 %v649_v61 }
 0x27d   :  { %vm570_vm11 = vmor %vm568_vm10, %vm569_vm9 }
 0x27e   :  { %v564_v63 = vmul.f32 %v649_v61, %v563_v62 }
 0x280   :  { %v565_v0 = vmul.f32 0.5, %v564_v63 }
 0x282   :  { %v566_v1 = vsub.f32 1.5, %v565_v0 }
 0x284   :  { %v567_v2 = vmul.f32 %v649_v61, %v566_v1 }
 0x286   :  { %v571_v4 = vsel %vm570_vm11, %v649_v61, %v567_v2 }
 0x287   :  { %v573_v5 = vmul.f32 %v572_v3, %v571_v4 }
 0x289   :  { %579 = vperm.xlu2 %646, %v573_v5   ;;  %v575_v7 = vmul.f32 %v573_v5, %v539_v41 }
 0x28b   :  { %v576_v8 = vsub.f32 %v574_v6, %v575_v7 }
 0x28d   :  { %586 = vperm.xlu0 %647, %v576_v8  }
 0x2e3   :  { %v580_v9 = vpop.permute.xlu2 %579 }
 0x2e4   :  { %v582_v10 = vmul.f32 %v580_v9, %v812_v16  ;;  %v583_v11 = vmul.f32 %v580_v9, %v814_v21  ;;  %v593_v12 = vmul.f32 %v580_v9, %v342_v32  ;;  %v594_v13 = vmul.f32 %v580_v9, %v519_v34 }
 0x2ff   :  { %v587_v14 = vpop.permute.xlu0 %586 }
 0x300   :  { %v589_v15 = vadd.f32 %v587_v14, %v582_v10  ;;  %v590_v17 = vadd.f32 %v587_v14, %v583_v11  ;;  %v595_v18 = vadd.f32 %v593_v12, %v587_v14  ;;  %v596_v19 = vadd.f32 %v594_v13, %v587_v14 }
 0x302   :  { %591 = vst [vmem:[#allocation2] sm:$0xff] %v589_v15 }
 0x303   :  { %592 = vst [vmem:[#allocation2 + $0x8] sm:$0xff] %v590_v17 }
 0x304   :  { %597 = vst [vmem:[#allocation2 + $0x10] sm:$0xff] %v595_v18 }
 0x305   :  { %598 = vst [vmem:[#allocation2 + $0x18] sm:$0xff] %v596_v19 }
 0x306   :  { %611 = dma.vmem_to_hbm [thread:$0]  %s604_s17, 512, %s606_s20, [#allocation3], %s694_s4, %s694_s4, %s695_s21  }
 0x307   :  { %674 = dma.done.wait [#allocation3], 512  }
 0x308   :  { %675 = vsyncadd [#allocation3], 4294966784 }
 0x309   :  { %616 = vsyncpa [#allocation3], 1 }

</bundles_post_ra>
